<compile_context>
chip_gen: v6e
topology: v6e:2x2x1
jax: 0.10.0
libtpu: 0.0.40
codegen_flags: <defaults>
</compile_context>

<pallas_src>
import math

import jax
import jax.numpy as jnp
from jax.experimental import pallas as pl
from jax.experimental.pallas import tpu as pltpu

_MiB = 1024 * 1024
# Below this total size, kernel launch/step overhead exceeds the add itself.
_SMALL_BYTES = 1 * _MiB
# Per-block DMA target; ~4 MiB blocks sit near the HBM roofline on v5e/v6e/v7x.
_TARGET_BLOCK_BYTES = 4 * _MiB


def _vmem_cap_bytes():
    """Physical VMEM per TensorCore, with a conservative (v7x, 64 MiB) fallback."""
    try:
        cap = int(pltpu.get_tpu_info().vmem_capacity_bytes)
        if cap > 0:
            return cap
    except Exception:
        pass
    return 64 * _MiB


def _sublane_granule(dtype):
    # f32 -> 8, bf16 -> 16, int8/fp8 -> 32 (sub-32-bit dtypes pack along sublanes).
    return max(8, 32 // jnp.dtype(dtype).itemsize)


def _add_bias_kernel(x_ref, b_ref, o_ref):
    # Pure elementwise VPU add: x (TN, TD) + bias (1, TD) broadcast over sublanes.
    o_ref[...] = x_ref[...] + b_ref[...]


def _choose_tiles(n_rows, n_cols, itemsize, granule, target_bytes):
    """Pick (tn, td) obeying the (8,128)/full-dim rule at roughly target_bytes."""
    td = n_cols
    # If even a single-granule row strip of full width blows the target and the
    # column axis is lane-tileable, tile D too (keeps huge C*H*W VMEM-safe).
    if granule * n_cols * itemsize > target_bytes and n_cols % 128 == 0 and n_cols > 128:
        cols = max(1, target_bytes // (granule * itemsize))
        td = min(n_cols, max(128, (cols // 128) * 128))
    rows = max(1, target_bytes // max(1, td * itemsize))
    if rows >= n_rows:
        tn = n_rows
    else:
        tn = min(n_rows, max(granule, (rows // granule) * granule))
    # v7x has 2 TensorCores: a single-step grid pins the stream on one TC, so
    # split "fits in one block" arrays into >= ~4 row blocks when legal.
    if tn == n_rows and td == n_cols and n_rows >= 4 * granule:
        split = -(-n_rows // 4)                      # ceil(N/4)
        split = -(-split // granule) * granule       # round up to sublane granule
        if split < n_rows:
            tn = split
    return tn, td


def _tiled_row_add(x2d, bias_row):
    """x2d: (N, D); bias_row: (D,) in the same dtype -> x2d + bias_row[None, :]."""
    N, D = x2d.shape
    dtype = x2d.dtype
    itemsize = jnp.dtype(dtype).itemsize
    granule = _sublane_granule(dtype)

    vmem_cap = _vmem_cap_bytes()
    # Never let the 2x(in) + 2x(out) double-buffered footprint approach the cap.
    target = min(_TARGET_BLOCK_BYTES, max(granule * 128 * itemsize, vmem_cap // 8))
    tn, td = _choose_tiles(N, D, itemsize, granule, target)

    block_bytes = tn * td * itemsize
    vmem_limit = min(
        max(4 * block_bytes + 2 * td * itemsize + 4 * _MiB, 16 * _MiB),
        (3 * vmem_cap) // 4,
    )

    grid = (pl.cdiv(N, tn), pl.cdiv(D, td))
    cost = pl.CostEstimate(
        flops=N * D,
        transcendentals=0,
        bytes_accessed=(2 * N * D + D) * itemsize,
    )

    return pl.pallas_call(
        _add_bias_kernel,
        out_shape=jax.ShapeDtypeStruct((N, D), dtype),
        grid_spec=pltpu.PrefetchScalarGridSpec(
            num_scalar_prefetch=0,
            grid=grid,
            in_specs=[
                pl.BlockSpec((tn, td), lambda i, j: (i, j)),   # streaming x tiles
                pl.BlockSpec((1, td), lambda i, j: (0, j)),    # bias row, resident over i
            ],
            out_specs=pl.BlockSpec((tn, td), lambda i, j: (i, j)),
        ),
        compiler_params=pltpu.CompilerParams(
            dimension_semantics=("parallel", "parallel"),
            vmem_limit_bytes=int(vmem_limit),
        ),
        cost_estimate=cost,
    )(x2d, bias_row.reshape(1, D))


def add_bias_2d(x, bias):
    """x: (N, C); bias: (C,) -> x + bias[None, :] with PyTorch-style promotion."""
    out_dtype = jnp.result_type(x.dtype, bias.dtype)
    x = x.astype(out_dtype)
    bias = bias.astype(out_dtype)
    N, C = x.shape
    itemsize = jnp.dtype(out_dtype).itemsize
    if N * C * itemsize <= _SMALL_BYTES:
        # Tiny RL-sized inputs: let XLA fuse the add into neighbors instead.
        return x + bias[None, :]
    if C < 128:
        # Lane-densify: fold rows into the lane axis so every store is a
        # full-width unmasked vst instead of a masked vst.msk with C/128 lanes.
        L = math.lcm(C, 128)
        if (N * C) % L == 0:
            x2 = x.reshape((N * C) // L, L)
            b2 = jnp.tile(bias, L // C)
            return _tiled_row_add(x2, b2).reshape(N, C)
    return _tiled_row_add(x, bias)


def add_bias_4d(x, bias):
    """x: (N, C, H, W) NCHW; bias: (C,) -> x + bias[None, :, None, None]."""
    out_dtype = jnp.result_type(x.dtype, bias.dtype)
    x = x.astype(out_dtype)
    bias = bias.astype(out_dtype)
    N, C, H, W = x.shape
    HW = H * W
    itemsize = jnp.dtype(out_dtype).itemsize
    if N * C * HW * itemsize <= _SMALL_BYTES:
        return x + bias[None, :, None, None]
    # Collapse to a lane-dense (N, C*HW) add; repeating the bias HW times per
    # channel matches the row-major flattened (C, HW) layout.
    bias_row = jnp.repeat(bias, HW)
    out = _tiled_row_add(x.reshape(N, C * HW), bias_row)
    return out.reshape(N, C, H, W)


class AddBias:
    """JAX/Pallas equivalent of the PyTorch AddBias module."""

    def __init__(self, bias):
        # Mirrors nn.Parameter(bias.unsqueeze(1)): stored as (C, 1).
        self._bias = jnp.asarray(bias).reshape(-1, 1)

    def __call__(self, x):
        bias_flat = self._bias[:, 0]
        if x.ndim == 2:
            return add_bias_2d(x, bias_flat)
        return add_bias_4d(x, bias_flat)


if __name__ == "__main__":
    key = jax.random.PRNGKey(0)
    k1, k2, k3, k4, k5, k6, k7 = jax.random.split(key, 7)

    # --- Spec-sized cases (small-input fused path) ---
    C = 4
    bias = jax.random.normal(k1, (C,), dtype=jnp.float32)
    module = AddBias(bias)

    x2 = jax.random.normal(k2, (2, C), dtype=jnp.float32)
    y2 = jax.block_until_ready(module(x2))
    assert y2.shape == x2.shape and y2.dtype == x2.dtype
    assert jnp.allclose(y2, x2 + bias[None, :], atol=1e-6), "2D mismatch"

    x4 = jax.random.normal(k3, (2, C, 16, 16), dtype=jnp.float32)
    y4 = jax.block_until_ready(module(x4))
    assert y4.shape == x4.shape and y4.dtype == x4.dtype
    assert jnp.allclose(y4, x4 + bias[None, :, None, None], atol=1e-6), "4D mismatch"

    # --- Pallas-kernel path: 2-D lane-densified small-C add (8192 x 64, 2 MiB) ---
    C2 = 64
    bias_b = jax.random.normal(k4, (C2,), dtype=jnp.float32)
    x2b = jax.random.normal(k5, (8192, C2), dtype=jnp.float32)
    y2b = jax.block_until_ready(AddBias(bias_b)(x2b))
    assert y2b.shape == x2b.shape and y2b.dtype == x2b.dtype
    assert jnp.allclose(y2b, x2b + bias_b[None, :], atol=1e-6), "2D pallas mismatch"

    # --- Pallas-kernel path: 4-D flattened channel add (16, 32, 32, 32 = 2 MiB) ---
    C4 = 32
    bias_c = jax.random.normal(k6, (C4,), dtype=jnp.float32)
    x4c = jax.random.normal(k7, (16, C4, 32, 32), dtype=jnp.float32)
    y4c = jax.block_until_ready(AddBias(bias_c)(x4c))
    assert y4c.shape == x4c.shape and y4c.dtype == x4c.dtype
    assert jnp.allclose(y4c, x4c + bias_c[None, :, None, None], atol=1e-6), "4D pallas mismatch"

    print("KERNEL_OK")
</pallas_src>

<mosaic_0001>
module attributes {stable_mosaic.version = 11 : i64} {
  func.func @_add_bias_kernel(%arg0: i32, %arg1: i32, %arg2: memref<1024x128xf32, #tpu.memory_space<vmem>>, %arg3: memref<1x128xf32, #tpu.memory_space<vmem>>, %arg4: memref<1024x128xf32, #tpu.memory_space<vmem>>) attributes {dimension_semantics = [#tpu.dimension_semantics<parallel>, #tpu.dimension_semantics<parallel>], iteration_bounds = array<i64: 4, 1>, scalar_prefetch = 0 : i64, scratch_operands = 0 : i64, tpu.core_type = #tpu.core_type<tc>, window_params = [{transform_indices = @transform_0, window_bounds = array<i64: 1024, 128>}, {transform_indices = @transform_1, window_bounds = array<i64: 1, 128>}, {transform_indices = @transform_2, window_bounds = array<i64: 1024, 128>}]} {
    %c0 = arith.constant 0 : index
    %c0_0 = arith.constant 0 : index
    %0 = vector.load %arg2[%c0, %c0_0] : memref<1024x128xf32, #tpu.memory_space<vmem>>, vector<1024x128xf32>
    %c0_1 = arith.constant 0 : index
    %c0_2 = arith.constant 0 : index
    %1 = vector.load %arg3[%c0_1, %c0_2] : memref<1x128xf32, #tpu.memory_space<vmem>>, vector<1x128xf32>
    %2 = vector.broadcast %1 : vector<1x128xf32> to vector<1024x128xf32>
    %3 = arith.addf %0, %2 : vector<1024x128xf32>
    %c0_3 = arith.constant 0 : index
    %c0_4 = arith.constant 0 : index
    %4 = vector.load %arg4[%c0_3, %c0_4] : memref<1024x128xf32, #tpu.memory_space<vmem>>, vector<1024x128xf32>
    tpu.vector_store %arg4[%c0_3, %c0_4], %3 {strides = array<i32>} : memref<1024x128xf32, #tpu.memory_space<vmem>>, vector<1024x128xf32>,
    return
  }
  func.func @transform_0(%arg0: i32, %arg1: i32) -> (i32, i32) {
    %c0_i32 = arith.constant 0 : i32
    return %arg0, %arg1 : i32, i32
  }
  func.func @transform_1(%arg0: i32, %arg1: i32) -> (i32, i32) {
    %c0_i32 = arith.constant 0 : i32
    %c0_i32_0 = arith.constant 0 : i32
    return %c0_i32, %arg1 : i32, i32
  }
  func.func @transform_2(%arg0: i32, %arg1: i32) -> (i32, i32) {
    %c0_i32 = arith.constant 0 : i32
    return %arg0, %arg1 : i32, i32
  }
}

</mosaic_0001>

<bundles_post_ra>
// kernel: tpu_custom_call.1
= control target key start
LH: loop header
LB: loop body
LE: loop exit
PB: predicated region body
PF: predicated region fallthrough
CT: control target
= control target key end

     0   :  { %7 = vsyncpa [#allocation3], 0  ;;  %s1539_s0 = inlined_call_operand.hbm [shape: f32[4096,128], index: 0, kind: input, shape index: {}]   ;;  %s1540_s1 = inlined_call_operand.hbm [shape: f32[1,128], index: 1, kind: input, shape index: {}]   ;;  %s1541_s2 = inlined_call_operand.hbm [shape: f32[4096,128], index: 2, kind: output, shape index: {}]  }
   0x1   :  { %9 = vsyncpa [#allocation3 + $0x1], 0 }
   0x2   :  { %10 = vsyncpa [#allocation6], 0 }
   0x3   :  { %11 = vsyncpa [#allocation4], 0 }
   0x4   :  { %13 = vsyncpa [#allocation4 + $0x1], 0  ;;  %s963_s9 = smov 0   ;;  %s965_s10 = smov 0  }
   0x5   :  { %s967_s11 = smov 0   ;;  %s969_s12 = smov 0  }
   0x6   :  { %s971_s13 = smov 0   ;;  %s973_s14 = smov 0  }
   0x7 LB: > { %s704_s15 = sadd.s32 4294967295, %s939_s14   ;;  %s705_s16 = sadd.s32 4294967294, %s939_s14   ;;  %s939_s14 = sphi %s973_s14, %s19_s14   ;;  %s935_s13 = sphi %s971_s13, %s1558_s13   ;;  %s931_s12 = sphi %s969_s12, %s1557_s12   ;;  %s927_s11 = sphi %s967_s11, %s1556_s11   ;;  %s923_s10 = sphi %s965_s10, %s1555_s10   ;;  %s919_s9 = sphi %s963_s9, %s1554_s9  }
   0x8   : > { %s40_s17 = sadd.s32 1, %s927_s11  ;;  %p47_p0 = scmp.ne.s32.totalorder %s927_s11, %s923_s10 }
   0x9   : > { %p48_p1 = scmp.eq.s32.totalorder %s939_s14, 0  ;;  %p53_p2 = scmp.ne.s32.totalorder %s923_s10, %s919_s9 }
   0xa   : > { %p1001_p3 = scmp.eq.s32.totalorder %s704_s15, 0  ;;  %p105_p4 = scmp.eq.s32.totalorder %s704_s15, 3 }
   0xb   : > { %p1005_p5 = por %p48_p1, %p47_p0  ;;  %p111_p6 = scmp.eq.s32.totalorder %s705_s16, 3 }
   0xc   : > { %p1011_p7 = por %p1001_p3, %p53_p2  ;;  %p1015_p8 = por %p105_p4, %p47_p0 }
   0xd   : > { %p1019_p9 = por %p111_p6, %p53_p2  ;;  %p706_p10 = scmp.ge.s32.totalorder %s939_s14, 1 }
   0xe   : > { %s1546_s21 = scalar_select %p1015_p8, 1, 0 }
   0xf   : > { %s1547_s22 = scalar_select %p1019_p9, 1, 0 }
  0x10   : > { %p118_p11 = scmp.lt.s32.totalorder %s939_s14, 5  ;;  %s941_s24 = smov [#allocation5]  }
  0x11   : > { %s133_s25 = sshll.u32 %s941_s24, 4  ;;  %p745_p13 = scmp.lt.s32.totalorder %s939_s14, 4  ;;  %s134_s25 = int_to_ptr.vmem [resolvable:$true] %s133_s25 }
  0x12   : > { %p1025_p12 = pnand %p706_p10, %p118_p11  ;;  %s31_s28 = sadd.s32 1, %s935_s13 }
  0x13   : > { %p1034_p1 = pnand %p745_p13, %p1005_p5  ;;  %p1045_p4 = scmp.ge.s32.totalorder %s31_s28, 4 }
  0x14   : > { %p732_p0 = pneg %p1025_p12  ;;  %s144_s30 = sand.u32 1, %s927_s11  }
  0x15   : > { %s812_s3 = scalar_lea.vmem %s134_s25, 16  ;;  %s819_s4 = scalar_lea.vmem %s134_s25, 32 }
  0x16   : > { %p1040_p2 = pnand %p732_p0, %p1001_p3  ;;  %p813_p10 = scmp.ne.s32.totalorder %s134_s25, %s812_s3 }
  0x17   : > { %p820_p13 = scmp.lt.s32.totalorder %s134_s25, %s134_s25  ;;  %p821_p9 = scmp.lt.s32.totalorder %s819_s4, %s812_s3 }
  0x18   : > { %p803_p6 = pneg %p1040_p2 }
  0x19   : > { %p822_p0 = por %p821_p9, %p820_p13 }
  0x1a   : > { %p815_p5 = pnand %p813_p10, %p803_p6 }
  0x1c   : > { %p816_p11 = pneg %p815_p5 }
  0x1e   : > { %p823_p8 = pnand %p822_p0, %p816_p11 }
  0x20   : > { %826 = shalt.err (!%p823_p8)
}
  0x21   : > { %735 = dma.hbm_to_vmem [thread:$0]  (!%p1040_p2), %s1540_s1, 16, %s134_s25, [#allocation6]  }
  0x22   : > { %s1560_s28 = smov (%p1045_p4, %s31_s28), 0  ;;  %s709_s7 = sshll.u32 %s144_s30, 10 }
  0x23   : > { %s35_s8 = ssub.s32 %s935_s13, %s1560_s28  ;;  %s722_s15 = sshll.u32 %s935_s13, 14 }
  0x24   : > { %p38_p9 = scmp.eq.s32.totalorder %s35_s8, 0  ;;  %s155_s24 = scalar_lea.hbm %s1539_s0, %s722_s15 }
  0x25   : > { %s148_s27 = scalar_lea.vmem [#allocation2], %s709_s7  ;;  %s145_s5 = scalar_lea.sflag [#allocation3], %s144_s30 }
  0x26   : > { %s156_s3 = sshll.u32 %s148_s27, 4  ;;  %p829_p8 = pneg %p1034_p1  ;;  %s157_s3 = int_to_ptr.vmem [resolvable:$true] %s156_s3 }
  0x27   : > { %s1070_s4 = scalar_select %p38_p9, %s927_s11, %s40_s17  }
  0x28   : > { %s840_s25 = scalar_lea.vmem %s157_s3, 16384  ;;  %s942_s29 = smov [#allocation2]  }
  0x29   : > { %p841_p2 = scmp.ne.s32.totalorder %s157_s3, %s840_s25  ;;  %s845_s6 = sshll.u32 %s942_s29, 4  ;;  %s846_s6 = int_to_ptr.vmem [resolvable:$false] %s845_s6 }
  0x2a   : > { %s847_s8 = scalar_lea.vmem %s846_s6, 32768  ;;  %p848_p10 = scmp.lt.s32.totalorder %s157_s3, %s846_s6 }
  0x2b   : > { %p843_p4 = pnand %p841_p2, %p829_p8  ;;  %p849_p5 = scmp.lt.s32.totalorder %s847_s8, %s840_s25 }
  0x2d   : > { %p844_p6 = pneg %p843_p4  ;;  %p850_p11 = por %p849_p5, %p848_p10 }
  0x2f   : > { %p851_p13 = pnand %p850_p11, %p844_p6 }
  0x31   : > { %854 = shalt.err (!%p851_p13)
}
  0x32   : > { %s943_s7 = smov 128   ;;  %s944_s17 = smov 8  }
  0x33   : > { %739 = dma.hbm_to_vmem [thread:$0]  (!%p1034_p1), %s155_s24, 16384, %s157_s3, %s145_s5, %s943_s7, %s943_s7, %s944_s17  }
  0x34   : > { %168 = sbr.rel (%p1025_p12) target bundleno = 141 (0x8d), region = 28  ;;  %s1079_s30 = sand.u32 (!%p1025_p12), 1, %s923_s10  }
  0x35   : > { %s713_s15 = sshll.u32 (!%p1025_p12), %s1079_s30, 10  ;;  %s171_s16 = scalar_lea.sflag (!%p1025_p12), [#allocation3], %s1079_s30 }
  0x36   : > { %s1083_s19 = scalar_lea.vmem (!%p1025_p12), [#allocation2], %s713_s15 }
  0x39   : > { %906 = dma.done.wait (%p1011_p7), %s171_s16, 16384  }
  0x3a   : > { %908 = vsyncadd (%p1011_p7), %s171_s16, 4294950912 }
  0x3b   : > { %910 = dma.done.wait (%p1001_p3), [#allocation6], 16  }
  0x3c   : > { %912 = vsyncadd (%p1001_p3), [#allocation6], 4294967280  ;;  %v201_v0 = vld [vmem:[%s1083_s19] sm:$0xff]  ;;  %v202_v2 = vld [vmem:[%s1083_s19 + $0x8] sm:$0xff]  ;;  %s1108_s18 = scalar_lea.vmem [#allocation7], %s713_s15  ;;  %s723_s20 = sshll.u32 %s931_s12, 14 }
  0x3d   : > { %v1094_v1 = vld [vmem:[#allocation5] ss:$0 sm:$0xff]  ;;  %v203_v5 = vld [vmem:[%s1083_s19 + $0x10] sm:$0xff]  ;;  %v204_v6 = vld [vmem:[%s1083_s19 + $0x18] sm:$0xff]  ;;  %s607_s23 = sshll.u32 %s1108_s18, 4  ;;  %s1476_s27 = scalar_lea.hbm %s1541_s2, %s723_s20  ;;  %s1480_s23 = int_to_ptr.vmem [resolvable:$true] %s607_s23 }
  0x3e   : > { %v336_v3 = vadd.f32 %v1094_v1, %v201_v0  ;;  %v337_v4 = vadd.f32 %v1094_v1, %v202_v2  ;;  %v205_v7 = vld [vmem:[%s1083_s19 + $0x20] sm:$0xff]  ;;  %v338_v8 = vadd.f32 %v1094_v1, %v203_v5  ;;  %v339_v9 = vadd.f32 %v1094_v1, %v204_v6  ;;  %v206_v11 = vld [vmem:[%s1083_s19 + $0x28] sm:$0xff]  ;;  %v207_v12 = vld [vmem:[%s1083_s19 + $0x30] sm:$0xff]  ;;  %s593_s12 = scalar_lea.sflag [#allocation4], %s1079_s30  ;;  %s855_s3 = scalar_lea.vmem %s1480_s23, 16384 }
  0x3f   : > { %v340_v10 = vadd.f32 %v1094_v1, %v205_v7  ;;  %v208_v13 = vld [vmem:[%s1083_s19 + $0x38] sm:$0xff]  ;;  %v341_v14 = vadd.f32 %v1094_v1, %v206_v11  ;;  %v342_v15 = vadd.f32 %v1094_v1, %v207_v12  ;;  %v209_v17 = vld [vmem:[%s1083_s19 + $0x40] sm:$0xff]  ;;  %v210_v18 = vld [vmem:[%s1083_s19 + $0x48] sm:$0xff]  ;;  %p856_p3 = scmp.ne.s32.totalorder %s1480_s23, %s855_s3  ;;  %p1552_p7 = scmp.ne.s32.totalorder %s1546_s21, 0 }
  0x40   : > { %464 = vst [vmem:[%s1108_s18] sm:$0xff] %v336_v3  ;;  %465 = vst [vmem:[%s1108_s18 + $0x8] sm:$0xff] %v337_v4  ;;  %v343_v16 = vadd.f32 %v1094_v1, %v208_v13  ;;  %v211_v19 = vld [vmem:[%s1083_s19 + $0x50] sm:$0xff]  ;;  %v344_v20 = vadd.f32 %v1094_v1, %v209_v17  ;;  %v345_v21 = vadd.f32 %v1094_v1, %v210_v18  ;;  %v212_v23 = vld [vmem:[%s1083_s19 + $0x58] sm:$0xff]  ;;  %s945_s5 = smov [#allocation7]  }
  0x41   : > { %466 = vst [vmem:[%s1108_s18 + $0x10] sm:$0xff] %v338_v8  ;;  %467 = vst [vmem:[%s1108_s18 + $0x18] sm:$0xff] %v339_v9  ;;  %v346_v22 = vadd.f32 %v1094_v1, %v211_v19  ;;  %v213_v24 = vld [vmem:[%s1083_s19 + $0x60] sm:$0xff]  ;;  %v214_v25 = vld [vmem:[%s1083_s19 + $0x68] sm:$0xff]  ;;  %v347_v26 = vadd.f32 %v1094_v1, %v212_v23  ;;  %p857_p12 = pnand %p856_p3, %p1552_p7  ;;  %s859_s25 = sshll.u32 %s945_s5, 4  ;;  %s860_s25 = int_to_ptr.vmem [resolvable:$false] %s859_s25 }
  0x42   : > { %468 = vst [vmem:[%s1108_s18 + $0x20] sm:$0xff] %v340_v10  ;;  %469 = vst [vmem:[%s1108_s18 + $0x28] sm:$0xff] %v341_v14  ;;  %v348_v27 = vadd.f32 %v1094_v1, %v213_v24  ;;  %v349_v28 = vadd.f32 %v1094_v1, %v214_v25  ;;  %v215_v29 = vld [vmem:[%s1083_s19 + $0x70] sm:$0xff]  ;;  %v216_v30 = vld [vmem:[%s1083_s19 + $0x78] sm:$0xff]  ;;  %s861_s29 = scalar_lea.vmem %s860_s25, 32768  ;;  %p862_p0 = scmp.lt.s32.totalorder %s1480_s23, %s860_s25 }
  0x43   : > { %470 = vst [vmem:[%s1108_s18 + $0x30] sm:$0xff] %v342_v15  ;;  %471 = vst [vmem:[%s1108_s18 + $0x38] sm:$0xff] %v343_v16  ;;  %v217_v31 = vld [vmem:[%s1083_s19 + $0x80] sm:$0xff]  ;;  %v350_v32 = vadd.f32 %v1094_v1, %v215_v29  ;;  %v351_v33 = vadd.f32 %v1094_v1, %v216_v30  ;;  %v218_v35 = vld [vmem:[%s1083_s19 + $0x88] sm:$0xff]  ;;  %p858_p1 = pneg %p857_p12  ;;  %p863_p9 = scmp.lt.s32.totalorder %s861_s29, %s855_s3 }
  0x44   : > { %472 = vst [vmem:[%s1108_s18 + $0x40] sm:$0xff] %v344_v20  ;;  %473 = vst [vmem:[%s1108_s18 + $0x48] sm:$0xff] %v345_v21  ;;  %v352_v34 = vadd.f32 %v1094_v1, %v217_v31  ;;  %v219_v36 = vld [vmem:[%s1083_s19 + $0x90] sm:$0xff]  ;;  %v220_v37 = vld [vmem:[%s1083_s19 + $0x98] sm:$0xff]  ;;  %v353_v38 = vadd.f32 %v1094_v1, %v218_v35 }
  0x45   : > { %474 = vst [vmem:[%s1108_s18 + $0x50] sm:$0xff] %v346_v22  ;;  %475 = vst [vmem:[%s1108_s18 + $0x58] sm:$0xff] %v347_v26  ;;  %v354_v39 = vadd.f32 %v1094_v1, %v219_v36  ;;  %v355_v40 = vadd.f32 %v1094_v1, %v220_v37  ;;  %v221_v41 = vld [vmem:[%s1083_s19 + $0xa0] sm:$0xff]  ;;  %v222_v42 = vld [vmem:[%s1083_s19 + $0xa8] sm:$0xff]  ;;  %p864_p8 = por %p863_p9, %p862_p0 }
  0x46   : > { %476 = vst [vmem:[%s1108_s18 + $0x60] sm:$0xff] %v348_v27  ;;  %477 = vst [vmem:[%s1108_s18 + $0x68] sm:$0xff] %v349_v28  ;;  %v223_v43 = vld [vmem:[%s1083_s19 + $0xb0] sm:$0xff]  ;;  %v356_v44 = vadd.f32 %v1094_v1, %v221_v41  ;;  %v357_v45 = vadd.f32 %v1094_v1, %v222_v42  ;;  %v224_v47 = vld [vmem:[%s1083_s19 + $0xb8] sm:$0xff] }
  0x47   : > { %478 = vst [vmem:[%s1108_s18 + $0x70] sm:$0xff] %v350_v32  ;;  %479 = vst [vmem:[%s1108_s18 + $0x78] sm:$0xff] %v351_v33  ;;  %v358_v46 = vadd.f32 %v1094_v1, %v223_v43  ;;  %v225_v48 = vld [vmem:[%s1083_s19 + $0xc0] sm:$0xff]  ;;  %v226_v49 = vld [vmem:[%s1083_s19 + $0xc8] sm:$0xff]  ;;  %v359_v50 = vadd.f32 %v1094_v1, %v224_v47  ;;  %p865_p2 = pnand %p864_p8, %p858_p1 }
  0x48   : > { %480 = vst [vmem:[%s1108_s18 + $0x80] sm:$0xff] %v352_v34  ;;  %481 = vst [vmem:[%s1108_s18 + $0x88] sm:$0xff] %v353_v38  ;;  %v360_v51 = vadd.f32 %v1094_v1, %v225_v48  ;;  %v361_v52 = vadd.f32 %v1094_v1, %v226_v49  ;;  %v227_v53 = vld [vmem:[%s1083_s19 + $0xd0] sm:$0xff]  ;;  %v228_v54 = vld [vmem:[%s1083_s19 + $0xd8] sm:$0xff] }
  0x49   : > { %482 = vst [vmem:[%s1108_s18 + $0x90] sm:$0xff] %v354_v39  ;;  %483 = vst [vmem:[%s1108_s18 + $0x98] sm:$0xff] %v355_v40  ;;  %v229_v55 = vld [vmem:[%s1083_s19 + $0xe0] sm:$0xff]  ;;  %v362_v56 = vadd.f32 %v1094_v1, %v227_v53  ;;  %v363_v57 = vadd.f32 %v1094_v1, %v228_v54  ;;  %v230_v59 = vld [vmem:[%s1083_s19 + $0xe8] sm:$0xff] }
  0x4a   : > { %484 = vst [vmem:[%s1108_s18 + $0xa0] sm:$0xff] %v356_v44  ;;  %485 = vst [vmem:[%s1108_s18 + $0xa8] sm:$0xff] %v357_v45  ;;  %v364_v58 = vadd.f32 %v1094_v1, %v229_v55  ;;  %v231_v60 = vld [vmem:[%s1083_s19 + $0xf0] sm:$0xff]  ;;  %v232_v61 = vld [vmem:[%s1083_s19 + $0xf8] sm:$0xff]  ;;  %v365_v62 = vadd.f32 %v1094_v1, %v230_v59 }
  0x4b   : > { %486 = vst [vmem:[%s1108_s18 + $0xb0] sm:$0xff] %v358_v46  ;;  %487 = vst [vmem:[%s1108_s18 + $0xb8] sm:$0xff] %v359_v50  ;;  %v366_v63 = vadd.f32 %v1094_v1, %v231_v60  ;;  %v367_v0 = vadd.f32 %v1094_v1, %v232_v61  ;;  %v233_v2 = vld [vmem:[%s1083_s19 + $0x100] sm:$0xff]  ;;  %v234_v3 = vld [vmem:[%s1083_s19 + $0x108] sm:$0xff] }
  0x4c   : > { %488 = vst [vmem:[%s1108_s18 + $0xc0] sm:$0xff] %v360_v51  ;;  %489 = vst [vmem:[%s1108_s18 + $0xc8] sm:$0xff] %v361_v52  ;;  %v235_v4 = vld [vmem:[%s1083_s19 + $0x110] sm:$0xff]  ;;  %v368_v5 = vadd.f32 %v1094_v1, %v233_v2  ;;  %v369_v6 = vadd.f32 %v1094_v1, %v234_v3  ;;  %v236_v8 = vld [vmem:[%s1083_s19 + $0x118] sm:$0xff] }
  0x4d   : > { %490 = vst [vmem:[%s1108_s18 + $0xd0] sm:$0xff] %v362_v56  ;;  %491 = vst [vmem:[%s1108_s18 + $0xd8] sm:$0xff] %v363_v57  ;;  %v370_v7 = vadd.f32 %v1094_v1, %v235_v4  ;;  %v237_v9 = vld [vmem:[%s1083_s19 + $0x120] sm:$0xff]  ;;  %v238_v10 = vld [vmem:[%s1083_s19 + $0x128] sm:$0xff]  ;;  %v371_v11 = vadd.f32 %v1094_v1, %v236_v8 }
  0x4e   : > { %492 = vst [vmem:[%s1108_s18 + $0xe0] sm:$0xff] %v364_v58  ;;  %493 = vst [vmem:[%s1108_s18 + $0xe8] sm:$0xff] %v365_v62  ;;  %v372_v12 = vadd.f32 %v1094_v1, %v237_v9  ;;  %v373_v13 = vadd.f32 %v1094_v1, %v238_v10  ;;  %v239_v14 = vld [vmem:[%s1083_s19 + $0x130] sm:$0xff]  ;;  %v240_v15 = vld [vmem:[%s1083_s19 + $0x138] sm:$0xff] }
  0x4f   : > { %494 = vst [vmem:[%s1108_s18 + $0xf0] sm:$0xff] %v366_v63  ;;  %495 = vst [vmem:[%s1108_s18 + $0xf8] sm:$0xff] %v367_v0  ;;  %v241_v16 = vld [vmem:[%s1083_s19 + $0x140] sm:$0xff]  ;;  %v374_v17 = vadd.f32 %v1094_v1, %v239_v14  ;;  %v375_v18 = vadd.f32 %v1094_v1, %v240_v15  ;;  %v242_v20 = vld [vmem:[%s1083_s19 + $0x148] sm:$0xff] }
  0x50   : > { %496 = vst [vmem:[%s1108_s18 + $0x100] sm:$0xff] %v368_v5  ;;  %497 = vst [vmem:[%s1108_s18 + $0x108] sm:$0xff] %v369_v6  ;;  %v376_v19 = vadd.f32 %v1094_v1, %v241_v16  ;;  %v243_v21 = vld [vmem:[%s1083_s19 + $0x150] sm:$0xff]  ;;  %v244_v22 = vld [vmem:[%s1083_s19 + $0x158] sm:$0xff]  ;;  %v377_v23 = vadd.f32 %v1094_v1, %v242_v20 }
  0x51   : > { %498 = vst [vmem:[%s1108_s18 + $0x110] sm:$0xff] %v370_v7  ;;  %499 = vst [vmem:[%s1108_s18 + $0x118] sm:$0xff] %v371_v11  ;;  %v378_v24 = vadd.f32 %v1094_v1, %v243_v21  ;;  %v379_v25 = vadd.f32 %v1094_v1, %v244_v22  ;;  %v245_v26 = vld [vmem:[%s1083_s19 + $0x160] sm:$0xff]  ;;  %v246_v27 = vld [vmem:[%s1083_s19 + $0x168] sm:$0xff] }
  0x52   : > { %500 = vst [vmem:[%s1108_s18 + $0x120] sm:$0xff] %v372_v12  ;;  %501 = vst [vmem:[%s1108_s18 + $0x128] sm:$0xff] %v373_v13  ;;  %v247_v28 = vld [vmem:[%s1083_s19 + $0x170] sm:$0xff]  ;;  %v380_v29 = vadd.f32 %v1094_v1, %v245_v26  ;;  %v381_v30 = vadd.f32 %v1094_v1, %v246_v27  ;;  %v248_v32 = vld [vmem:[%s1083_s19 + $0x178] sm:$0xff] }
  0x53   : > { %502 = vst [vmem:[%s1108_s18 + $0x130] sm:$0xff] %v374_v17  ;;  %503 = vst [vmem:[%s1108_s18 + $0x138] sm:$0xff] %v375_v18  ;;  %v382_v31 = vadd.f32 %v1094_v1, %v247_v28  ;;  %v249_v33 = vld [vmem:[%s1083_s19 + $0x180] sm:$0xff]  ;;  %v250_v34 = vld [vmem:[%s1083_s19 + $0x188] sm:$0xff]  ;;  %v383_v35 = vadd.f32 %v1094_v1, %v248_v32 }
  0x54   : > { %504 = vst [vmem:[%s1108_s18 + $0x140] sm:$0xff] %v376_v19  ;;  %505 = vst [vmem:[%s1108_s18 + $0x148] sm:$0xff] %v377_v23  ;;  %v384_v36 = vadd.f32 %v1094_v1, %v249_v33  ;;  %v385_v37 = vadd.f32 %v1094_v1, %v250_v34  ;;  %v251_v38 = vld [vmem:[%s1083_s19 + $0x190] sm:$0xff]  ;;  %v252_v39 = vld [vmem:[%s1083_s19 + $0x198] sm:$0xff] }
  0x55   : > { %506 = vst [vmem:[%s1108_s18 + $0x150] sm:$0xff] %v378_v24  ;;  %507 = vst [vmem:[%s1108_s18 + $0x158] sm:$0xff] %v379_v25  ;;  %v253_v40 = vld [vmem:[%s1083_s19 + $0x1a0] sm:$0xff]  ;;  %v386_v41 = vadd.f32 %v1094_v1, %v251_v38  ;;  %v387_v42 = vadd.f32 %v1094_v1, %v252_v39  ;;  %v254_v44 = vld [vmem:[%s1083_s19 + $0x1a8] sm:$0xff] }
  0x56   : > { %508 = vst [vmem:[%s1108_s18 + $0x160] sm:$0xff] %v380_v29  ;;  %509 = vst [vmem:[%s1108_s18 + $0x168] sm:$0xff] %v381_v30  ;;  %v388_v43 = vadd.f32 %v1094_v1, %v253_v40  ;;  %v255_v45 = vld [vmem:[%s1083_s19 + $0x1b0] sm:$0xff]  ;;  %v256_v46 = vld [vmem:[%s1083_s19 + $0x1b8] sm:$0xff]  ;;  %v389_v47 = vadd.f32 %v1094_v1, %v254_v44 }
  0x57   : > { %510 = vst [vmem:[%s1108_s18 + $0x170] sm:$0xff] %v382_v31  ;;  %511 = vst [vmem:[%s1108_s18 + $0x178] sm:$0xff] %v383_v35  ;;  %v390_v48 = vadd.f32 %v1094_v1, %v255_v45  ;;  %v391_v49 = vadd.f32 %v1094_v1, %v256_v46  ;;  %v257_v50 = vld [vmem:[%s1083_s19 + $0x1c0] sm:$0xff]  ;;  %v258_v51 = vld [vmem:[%s1083_s19 + $0x1c8] sm:$0xff] }
  0x58   : > { %512 = vst [vmem:[%s1108_s18 + $0x180] sm:$0xff] %v384_v36  ;;  %513 = vst [vmem:[%s1108_s18 + $0x188] sm:$0xff] %v385_v37  ;;  %v259_v52 = vld [vmem:[%s1083_s19 + $0x1d0] sm:$0xff]  ;;  %v392_v53 = vadd.f32 %v1094_v1, %v257_v50  ;;  %v393_v54 = vadd.f32 %v1094_v1, %v258_v51  ;;  %v260_v56 = vld [vmem:[%s1083_s19 + $0x1d8] sm:$0xff] }
  0x59   : > { %514 = vst [vmem:[%s1108_s18 + $0x190] sm:$0xff] %v386_v41  ;;  %515 = vst [vmem:[%s1108_s18 + $0x198] sm:$0xff] %v387_v42  ;;  %v394_v55 = vadd.f32 %v1094_v1, %v259_v52  ;;  %v261_v57 = vld [vmem:[%s1083_s19 + $0x1e0] sm:$0xff]  ;;  %v262_v58 = vld [vmem:[%s1083_s19 + $0x1e8] sm:$0xff]  ;;  %v395_v59 = vadd.f32 %v1094_v1, %v260_v56 }
  0x5a   : > { %516 = vst [vmem:[%s1108_s18 + $0x1a0] sm:$0xff] %v388_v43  ;;  %517 = vst [vmem:[%s1108_s18 + $0x1a8] sm:$0xff] %v389_v47  ;;  %v396_v60 = vadd.f32 %v1094_v1, %v261_v57  ;;  %v397_v61 = vadd.f32 %v1094_v1, %v262_v58  ;;  %v263_v62 = vld [vmem:[%s1083_s19 + $0x1f0] sm:$0xff]  ;;  %v264_v63 = vld [vmem:[%s1083_s19 + $0x1f8] sm:$0xff] }
  0x5b   : > { %518 = vst [vmem:[%s1108_s18 + $0x1b0] sm:$0xff] %v390_v48  ;;  %519 = vst [vmem:[%s1108_s18 + $0x1b8] sm:$0xff] %v391_v49  ;;  %v265_v0 = vld [vmem:[%s1083_s19 + $0x200] sm:$0xff]  ;;  %v398_v2 = vadd.f32 %v1094_v1, %v263_v62  ;;  %v399_v3 = vadd.f32 %v1094_v1, %v264_v63  ;;  %v266_v5 = vld [vmem:[%s1083_s19 + $0x208] sm:$0xff] }
  0x5c   : > { %520 = vst [vmem:[%s1108_s18 + $0x1c0] sm:$0xff] %v392_v53  ;;  %521 = vst [vmem:[%s1108_s18 + $0x1c8] sm:$0xff] %v393_v54  ;;  %v400_v4 = vadd.f32 %v1094_v1, %v265_v0  ;;  %v267_v6 = vld [vmem:[%s1083_s19 + $0x210] sm:$0xff]  ;;  %v268_v7 = vld [vmem:[%s1083_s19 + $0x218] sm:$0xff]  ;;  %v401_v8 = vadd.f32 %v1094_v1, %v266_v5 }
  0x5d   : > { %522 = vst [vmem:[%s1108_s18 + $0x1d0] sm:$0xff] %v394_v55  ;;  %523 = vst [vmem:[%s1108_s18 + $0x1d8] sm:$0xff] %v395_v59  ;;  %v402_v9 = vadd.f32 %v1094_v1, %v267_v6  ;;  %v403_v10 = vadd.f32 %v1094_v1, %v268_v7  ;;  %v269_v11 = vld [vmem:[%s1083_s19 + $0x220] sm:$0xff]  ;;  %v270_v12 = vld [vmem:[%s1083_s19 + $0x228] sm:$0xff] }
  0x5e   : > { %524 = vst [vmem:[%s1108_s18 + $0x1e0] sm:$0xff] %v396_v60  ;;  %525 = vst [vmem:[%s1108_s18 + $0x1e8] sm:$0xff] %v397_v61  ;;  %v271_v13 = vld [vmem:[%s1083_s19 + $0x230] sm:$0xff]  ;;  %v404_v14 = vadd.f32 %v1094_v1, %v269_v11  ;;  %v405_v15 = vadd.f32 %v1094_v1, %v270_v12  ;;  %v272_v17 = vld [vmem:[%s1083_s19 + $0x238] sm:$0xff] }
  0x5f   : > { %526 = vst [vmem:[%s1108_s18 + $0x1f0] sm:$0xff] %v398_v2  ;;  %527 = vst [vmem:[%s1108_s18 + $0x1f8] sm:$0xff] %v399_v3  ;;  %v406_v16 = vadd.f32 %v1094_v1, %v271_v13  ;;  %v273_v18 = vld [vmem:[%s1083_s19 + $0x240] sm:$0xff]  ;;  %v274_v19 = vld [vmem:[%s1083_s19 + $0x248] sm:$0xff]  ;;  %v407_v20 = vadd.f32 %v1094_v1, %v272_v17 }
  0x60   : > { %528 = vst [vmem:[%s1108_s18 + $0x200] sm:$0xff] %v400_v4  ;;  %529 = vst [vmem:[%s1108_s18 + $0x208] sm:$0xff] %v401_v8  ;;  %v408_v21 = vadd.f32 %v1094_v1, %v273_v18  ;;  %v409_v22 = vadd.f32 %v1094_v1, %v274_v19  ;;  %v275_v23 = vld [vmem:[%s1083_s19 + $0x250] sm:$0xff]  ;;  %v276_v24 = vld [vmem:[%s1083_s19 + $0x258] sm:$0xff] }
  0x61   : > { %530 = vst [vmem:[%s1108_s18 + $0x210] sm:$0xff] %v402_v9  ;;  %531 = vst [vmem:[%s1108_s18 + $0x218] sm:$0xff] %v403_v10  ;;  %v277_v25 = vld [vmem:[%s1083_s19 + $0x260] sm:$0xff]  ;;  %v410_v26 = vadd.f32 %v1094_v1, %v275_v23  ;;  %v411_v27 = vadd.f32 %v1094_v1, %v276_v24  ;;  %v278_v29 = vld [vmem:[%s1083_s19 + $0x268] sm:$0xff] }
  0x62   : > { %532 = vst [vmem:[%s1108_s18 + $0x220] sm:$0xff] %v404_v14  ;;  %533 = vst [vmem:[%s1108_s18 + $0x228] sm:$0xff] %v405_v15  ;;  %v412_v28 = vadd.f32 %v1094_v1, %v277_v25  ;;  %v279_v30 = vld [vmem:[%s1083_s19 + $0x270] sm:$0xff]  ;;  %v280_v31 = vld [vmem:[%s1083_s19 + $0x278] sm:$0xff]  ;;  %v413_v32 = vadd.f32 %v1094_v1, %v278_v29 }
  0x63   : > { %534 = vst [vmem:[%s1108_s18 + $0x230] sm:$0xff] %v406_v16  ;;  %535 = vst [vmem:[%s1108_s18 + $0x238] sm:$0xff] %v407_v20  ;;  %v414_v33 = vadd.f32 %v1094_v1, %v279_v30  ;;  %v415_v34 = vadd.f32 %v1094_v1, %v280_v31  ;;  %v281_v35 = vld [vmem:[%s1083_s19 + $0x280] sm:$0xff]  ;;  %v282_v36 = vld [vmem:[%s1083_s19 + $0x288] sm:$0xff] }
  0x64   : > { %536 = vst [vmem:[%s1108_s18 + $0x240] sm:$0xff] %v408_v21  ;;  %537 = vst [vmem:[%s1108_s18 + $0x248] sm:$0xff] %v409_v22  ;;  %v283_v37 = vld [vmem:[%s1083_s19 + $0x290] sm:$0xff]  ;;  %v416_v38 = vadd.f32 %v1094_v1, %v281_v35  ;;  %v417_v39 = vadd.f32 %v1094_v1, %v282_v36  ;;  %v284_v41 = vld [vmem:[%s1083_s19 + $0x298] sm:$0xff] }
  0x65   : > { %538 = vst [vmem:[%s1108_s18 + $0x250] sm:$0xff] %v410_v26  ;;  %539 = vst [vmem:[%s1108_s18 + $0x258] sm:$0xff] %v411_v27  ;;  %v418_v40 = vadd.f32 %v1094_v1, %v283_v37  ;;  %v285_v42 = vld [vmem:[%s1083_s19 + $0x2a0] sm:$0xff]  ;;  %v286_v43 = vld [vmem:[%s1083_s19 + $0x2a8] sm:$0xff]  ;;  %v419_v44 = vadd.f32 %v1094_v1, %v284_v41 }
  0x66   : > { %540 = vst [vmem:[%s1108_s18 + $0x260] sm:$0xff] %v412_v28  ;;  %541 = vst [vmem:[%s1108_s18 + $0x268] sm:$0xff] %v413_v32  ;;  %v420_v45 = vadd.f32 %v1094_v1, %v285_v42  ;;  %v421_v46 = vadd.f32 %v1094_v1, %v286_v43  ;;  %v287_v47 = vld [vmem:[%s1083_s19 + $0x2b0] sm:$0xff]  ;;  %v288_v48 = vld [vmem:[%s1083_s19 + $0x2b8] sm:$0xff] }
  0x67   : > { %542 = vst [vmem:[%s1108_s18 + $0x270] sm:$0xff] %v414_v33  ;;  %543 = vst [vmem:[%s1108_s18 + $0x278] sm:$0xff] %v415_v34  ;;  %v289_v49 = vld [vmem:[%s1083_s19 + $0x2c0] sm:$0xff]  ;;  %v422_v50 = vadd.f32 %v1094_v1, %v287_v47  ;;  %v423_v51 = vadd.f32 %v1094_v1, %v288_v48  ;;  %v290_v53 = vld [vmem:[%s1083_s19 + $0x2c8] sm:$0xff] }
  0x68   : > { %544 = vst [vmem:[%s1108_s18 + $0x280] sm:$0xff] %v416_v38  ;;  %545 = vst [vmem:[%s1108_s18 + $0x288] sm:$0xff] %v417_v39  ;;  %v424_v52 = vadd.f32 %v1094_v1, %v289_v49  ;;  %v291_v54 = vld [vmem:[%s1083_s19 + $0x2d0] sm:$0xff]  ;;  %v292_v55 = vld [vmem:[%s1083_s19 + $0x2d8] sm:$0xff]  ;;  %v425_v56 = vadd.f32 %v1094_v1, %v290_v53 }
  0x69   : > { %546 = vst [vmem:[%s1108_s18 + $0x290] sm:$0xff] %v418_v40  ;;  %547 = vst [vmem:[%s1108_s18 + $0x298] sm:$0xff] %v419_v44  ;;  %v426_v57 = vadd.f32 %v1094_v1, %v291_v54  ;;  %v427_v58 = vadd.f32 %v1094_v1, %v292_v55  ;;  %v293_v59 = vld [vmem:[%s1083_s19 + $0x2e0] sm:$0xff]  ;;  %v294_v60 = vld [vmem:[%s1083_s19 + $0x2e8] sm:$0xff] }
  0x6a   : > { %548 = vst [vmem:[%s1108_s18 + $0x2a0] sm:$0xff] %v420_v45  ;;  %549 = vst [vmem:[%s1108_s18 + $0x2a8] sm:$0xff] %v421_v46  ;;  %v295_v61 = vld [vmem:[%s1083_s19 + $0x2f0] sm:$0xff]  ;;  %v428_v62 = vadd.f32 %v1094_v1, %v293_v59  ;;  %v429_v63 = vadd.f32 %v1094_v1, %v294_v60  ;;  %v296_v2 = vld [vmem:[%s1083_s19 + $0x2f8] sm:$0xff] }
  0x6b   : > { %550 = vst [vmem:[%s1108_s18 + $0x2b0] sm:$0xff] %v422_v50  ;;  %551 = vst [vmem:[%s1108_s18 + $0x2b8] sm:$0xff] %v423_v51  ;;  %v430_v0 = vadd.f32 %v1094_v1, %v295_v61  ;;  %v297_v3 = vld [vmem:[%s1083_s19 + $0x300] sm:$0xff]  ;;  %v298_v4 = vld [vmem:[%s1083_s19 + $0x308] sm:$0xff]  ;;  %v431_v5 = vadd.f32 %v1094_v1, %v296_v2 }
  0x6c   : > { %552 = vst [vmem:[%s1108_s18 + $0x2c0] sm:$0xff] %v424_v52  ;;  %553 = vst [vmem:[%s1108_s18 + $0x2c8] sm:$0xff] %v425_v56  ;;  %v432_v6 = vadd.f32 %v1094_v1, %v297_v3  ;;  %v433_v7 = vadd.f32 %v1094_v1, %v298_v4  ;;  %v299_v8 = vld [vmem:[%s1083_s19 + $0x310] sm:$0xff]  ;;  %v300_v9 = vld [vmem:[%s1083_s19 + $0x318] sm:$0xff] }
  0x6d   : > { %554 = vst [vmem:[%s1108_s18 + $0x2d0] sm:$0xff] %v426_v57  ;;  %555 = vst [vmem:[%s1108_s18 + $0x2d8] sm:$0xff] %v427_v58  ;;  %v301_v10 = vld [vmem:[%s1083_s19 + $0x320] sm:$0xff]  ;;  %v434_v11 = vadd.f32 %v1094_v1, %v299_v8  ;;  %v435_v12 = vadd.f32 %v1094_v1, %v300_v9  ;;  %v302_v14 = vld [vmem:[%s1083_s19 + $0x328] sm:$0xff] }
  0x6e   : > { %556 = vst [vmem:[%s1108_s18 + $0x2e0] sm:$0xff] %v428_v62  ;;  %557 = vst [vmem:[%s1108_s18 + $0x2e8] sm:$0xff] %v429_v63  ;;  %v436_v13 = vadd.f32 %v1094_v1, %v301_v10  ;;  %v303_v15 = vld [vmem:[%s1083_s19 + $0x330] sm:$0xff]  ;;  %v304_v16 = vld [vmem:[%s1083_s19 + $0x338] sm:$0xff]  ;;  %v437_v17 = vadd.f32 %v1094_v1, %v302_v14 }
  0x6f   : > { %558 = vst [vmem:[%s1108_s18 + $0x2f0] sm:$0xff] %v430_v0  ;;  %559 = vst [vmem:[%s1108_s18 + $0x2f8] sm:$0xff] %v431_v5  ;;  %v438_v18 = vadd.f32 %v1094_v1, %v303_v15  ;;  %v439_v19 = vadd.f32 %v1094_v1, %v304_v16  ;;  %v305_v20 = vld [vmem:[%s1083_s19 + $0x340] sm:$0xff]  ;;  %v306_v21 = vld [vmem:[%s1083_s19 + $0x348] sm:$0xff] }
  0x70   : > { %560 = vst [vmem:[%s1108_s18 + $0x300] sm:$0xff] %v432_v6  ;;  %561 = vst [vmem:[%s1108_s18 + $0x308] sm:$0xff] %v433_v7  ;;  %v307_v22 = vld [vmem:[%s1083_s19 + $0x350] sm:$0xff]  ;;  %v440_v23 = vadd.f32 %v1094_v1, %v305_v20  ;;  %v441_v24 = vadd.f32 %v1094_v1, %v306_v21  ;;  %v308_v26 = vld [vmem:[%s1083_s19 + $0x358] sm:$0xff] }
  0x71   : > { %562 = vst [vmem:[%s1108_s18 + $0x310] sm:$0xff] %v434_v11  ;;  %563 = vst [vmem:[%s1108_s18 + $0x318] sm:$0xff] %v435_v12  ;;  %v442_v25 = vadd.f32 %v1094_v1, %v307_v22  ;;  %v309_v27 = vld [vmem:[%s1083_s19 + $0x360] sm:$0xff]  ;;  %v310_v28 = vld [vmem:[%s1083_s19 + $0x368] sm:$0xff]  ;;  %v443_v29 = vadd.f32 %v1094_v1, %v308_v26 }
  0x72   : > { %564 = vst [vmem:[%s1108_s18 + $0x320] sm:$0xff] %v436_v13  ;;  %565 = vst [vmem:[%s1108_s18 + $0x328] sm:$0xff] %v437_v17  ;;  %v444_v30 = vadd.f32 %v1094_v1, %v309_v27  ;;  %v445_v31 = vadd.f32 %v1094_v1, %v310_v28  ;;  %v311_v32 = vld [vmem:[%s1083_s19 + $0x370] sm:$0xff]  ;;  %v312_v33 = vld [vmem:[%s1083_s19 + $0x378] sm:$0xff] }
  0x73   : > { %566 = vst [vmem:[%s1108_s18 + $0x330] sm:$0xff] %v438_v18  ;;  %567 = vst [vmem:[%s1108_s18 + $0x338] sm:$0xff] %v439_v19  ;;  %v313_v34 = vld [vmem:[%s1083_s19 + $0x380] sm:$0xff]  ;;  %v446_v35 = vadd.f32 %v1094_v1, %v311_v32  ;;  %v447_v36 = vadd.f32 %v1094_v1, %v312_v33  ;;  %v314_v38 = vld [vmem:[%s1083_s19 + $0x388] sm:$0xff] }
  0x74   : > { %568 = vst [vmem:[%s1108_s18 + $0x340] sm:$0xff] %v440_v23  ;;  %569 = vst [vmem:[%s1108_s18 + $0x348] sm:$0xff] %v441_v24  ;;  %v448_v37 = vadd.f32 %v1094_v1, %v313_v34  ;;  %v315_v39 = vld [vmem:[%s1083_s19 + $0x390] sm:$0xff]  ;;  %v316_v40 = vld [vmem:[%s1083_s19 + $0x398] sm:$0xff]  ;;  %v449_v41 = vadd.f32 %v1094_v1, %v314_v38 }
  0x75   : > { %570 = vst [vmem:[%s1108_s18 + $0x350] sm:$0xff] %v442_v25  ;;  %571 = vst [vmem:[%s1108_s18 + $0x358] sm:$0xff] %v443_v29  ;;  %v450_v42 = vadd.f32 %v1094_v1, %v315_v39  ;;  %v451_v43 = vadd.f32 %v1094_v1, %v316_v40  ;;  %v317_v44 = vld [vmem:[%s1083_s19 + $0x3a0] sm:$0xff]  ;;  %v318_v45 = vld [vmem:[%s1083_s19 + $0x3a8] sm:$0xff] }
  0x76   : > { %572 = vst [vmem:[%s1108_s18 + $0x360] sm:$0xff] %v444_v30  ;;  %573 = vst [vmem:[%s1108_s18 + $0x368] sm:$0xff] %v445_v31  ;;  %v319_v46 = vld [vmem:[%s1083_s19 + $0x3b0] sm:$0xff]  ;;  %v452_v47 = vadd.f32 %v1094_v1, %v317_v44  ;;  %v453_v48 = vadd.f32 %v1094_v1, %v318_v45  ;;  %v320_v50 = vld [vmem:[%s1083_s19 + $0x3b8] sm:$0xff] }
  0x77   : > { %574 = vst [vmem:[%s1108_s18 + $0x370] sm:$0xff] %v446_v35  ;;  %575 = vst [vmem:[%s1108_s18 + $0x378] sm:$0xff] %v447_v36  ;;  %v454_v49 = vadd.f32 %v1094_v1, %v319_v46  ;;  %v321_v51 = vld [vmem:[%s1083_s19 + $0x3c0] sm:$0xff]  ;;  %v322_v52 = vld [vmem:[%s1083_s19 + $0x3c8] sm:$0xff]  ;;  %v455_v53 = vadd.f32 %v1094_v1, %v320_v50 }
  0x78   : > { %576 = vst [vmem:[%s1108_s18 + $0x380] sm:$0xff] %v448_v37  ;;  %577 = vst [vmem:[%s1108_s18 + $0x388] sm:$0xff] %v449_v41  ;;  %v456_v54 = vadd.f32 %v1094_v1, %v321_v51  ;;  %v457_v55 = vadd.f32 %v1094_v1, %v322_v52  ;;  %v323_v56 = vld [vmem:[%s1083_s19 + $0x3d0] sm:$0xff]  ;;  %v324_v57 = vld [vmem:[%s1083_s19 + $0x3d8] sm:$0xff] }
  0x79   : > { %578 = vst [vmem:[%s1108_s18 + $0x390] sm:$0xff] %v450_v42  ;;  %579 = vst [vmem:[%s1108_s18 + $0x398] sm:$0xff] %v451_v43  ;;  %v325_v58 = vld [vmem:[%s1083_s19 + $0x3e0] sm:$0xff]  ;;  %v458_v59 = vadd.f32 %v1094_v1, %v323_v56  ;;  %v459_v60 = vadd.f32 %v1094_v1, %v324_v57  ;;  %v326_v62 = vld [vmem:[%s1083_s19 + $0x3e8] sm:$0xff] }
  0x7a   : > { %580 = vst [vmem:[%s1108_s18 + $0x3a0] sm:$0xff] %v452_v47  ;;  %581 = vst [vmem:[%s1108_s18 + $0x3a8] sm:$0xff] %v453_v48  ;;  %v460_v61 = vadd.f32 %v1094_v1, %v325_v58  ;;  %v327_v63 = vld [vmem:[%s1083_s19 + $0x3f0] sm:$0xff]  ;;  %v328_v0 = vld [vmem:[%s1083_s19 + $0x3f8] sm:$0xff]  ;;  %v461_v2 = vadd.f32 %v1094_v1, %v326_v62 }
  0x7b   : > { %582 = vst [vmem:[%s1108_s18 + $0x3b0] sm:$0xff] %v454_v49  ;;  %583 = vst [vmem:[%s1108_s18 + $0x3b8] sm:$0xff] %v455_v53  ;;  %v462_v3 = vadd.f32 %v1094_v1, %v327_v63  ;;  %v463_v4 = vadd.f32 %v1094_v1, %v328_v0 }
  0x7c   : > { %584 = vst [vmem:[%s1108_s18 + $0x3c0] sm:$0xff] %v456_v54  ;;  %585 = vst [vmem:[%s1108_s18 + $0x3c8] sm:$0xff] %v457_v55 }
  0x7d   : > { %586 = vst [vmem:[%s1108_s18 + $0x3d0] sm:$0xff] %v458_v59  ;;  %587 = vst [vmem:[%s1108_s18 + $0x3d8] sm:$0xff] %v459_v60 }
  0x7e   : > { %588 = vst [vmem:[%s1108_s18 + $0x3e0] sm:$0xff] %v460_v61  ;;  %589 = vst [vmem:[%s1108_s18 + $0x3e8] sm:$0xff] %v461_v2 }
  0x7f   : > { %590 = vst [vmem:[%s1108_s18 + $0x3f0] sm:$0xff] %v462_v3  ;;  %591 = vst [vmem:[%s1108_s18 + $0x3f8] sm:$0xff] %v463_v4 }
  0x80   : > { %868 = shalt.err (!%p865_p2)
}
  0x81   : > { %s869_s6 = scalar_lea.hbm %s1476_s27, 16384  ;;  %s873_s17 = scalar_lea.hbm %s1541_s2, 65536 }
  0x82   : > { %p870_p4 = scmp.ne.s32.totalorder %s1476_s27, %s869_s6  ;;  %p874_p5 = scmp.lt.s32.totalorder %s1476_s27, %s1541_s2 }
  0x83   : > { %p875_p11 = scmp.lt.s32.totalorder %s873_s17, %s869_s6 }
  0x84   : > { %p871_p6 = pnand %p870_p4, %p1552_p7 }
  0x85   : > { %p876_p13 = por %p875_p11, %p874_p5 }
  0x86   : > { %p872_p10 = pneg %p871_p6 }
  0x88   : > { %p877_p3 = pnand %p876_p13, %p872_p10 }
  0x8a   : > { %880 = shalt.err (!%p877_p3)
}
  0x8b   : > { %s946_s19 = smov 128   ;;  %s947_s18 = smov 8  }
  0x8c   : > { %730 = dma.vmem_to_hbm [thread:$0]  (%p1552_p7), %s1480_s23, 16384, %s1476_s27, %s593_s12, %s946_s19, %s946_s19, %s947_s18  }
  0x8d PF: > { %p747_p12 = scmp.ge.s32.totalorder %s939_s14, 2  ;;  %s622_s20 = sand.u32 1, %s919_s9  }
  0x8e   : > { %p1553_p1 = scmp.ne.s32.totalorder %s1547_s22, 0  ;;  %s623_s26 = scalar_lea.sflag [#allocation4], %s622_s20 }
  0x90   : > { %p741_p0 = pnand %p747_p12, %p1553_p1 }
  0x92   : > { %p742_p9 = pneg %p741_p0 }
  0x94   : > { %914 = dma.done.wait (%p742_p9), %s623_s26, 16384  }
  0x95   : > { %916 = vsyncadd (%p742_p9), %s623_s26, 4294950912  ;;  %s19_s14 = sadd.s32 1, %s939_s14   ;;  %s1554_s9 = smov %s923_s10 }
  0x96   : > { %p16_p8 = scmp.ge.s32.totalorder %s19_s14, 6   ;;  %s1555_s10 = smov %s927_s11 }
  0x97   : > { %s1556_s11 = smov %s1070_s4  ;;  %s1557_s12 = smov %s935_s13 }
  0x98   : > { %s1558_s13 = smov %s1560_s28  ;;  %18 = sbr.rel (!%p16_p8) target bundleno = 7 (0x7), region = 78 }
  0x9d   :  { %628 = vsyncpa [#allocation3], 1 }
  0x9e   :  { %630 = vsyncpa [#allocation3 + $0x1], 1 }
  0x9f   :  { %631 = vsyncpa [#allocation6], 1 }
  0xa0   :  { %632 = vsyncpa [#allocation4], 1 }
  0xa1   :  { %634 = vsyncpa [#allocation4 + $0x1], 1 }

</bundles_post_ra>
